<compile_context>
chip_gen: v7x
topology: tpu7x:2x2x1
jax: 0.10.0
libtpu: 0.0.40
codegen_flags: <defaults>
</compile_context>

<pallas_src>
import functools

import jax
import jax.numpy as jnp
from jax.experimental import pallas as pl
from jax.experimental.pallas import tpu as pltpu

LANE = 128             # vreg lane width; hidden/action dims padded to this
MAX_BATCH_TILE = 1024  # sweepable knob: batch rows per grid step (multiple of 256)


def qnetwork_kernel(x_ref, w_ref, b_ref, out_ref, *, state_size, compute_dtype):
    # x_ref: [bt, state_size] f32, w_ref: [3, LANE, LANE] bf16,
    # b_ref: [3, 1, LANE] f32, out_ref: [bt, LANE] f32.
    x = x_ref[...].astype(compute_dtype)
    # fc1: static slice of the packed weight down to the real fan-in.
    h = jnp.dot(x, w_ref[0, :state_size, :],
                preferred_element_type=jnp.float32)
    h = jnp.maximum(h + b_ref[0], 0.0)                       # relu(fc1)
    h = jnp.dot(h.astype(compute_dtype), w_ref[1],
                preferred_element_type=jnp.float32)
    h = jnp.maximum(h + b_ref[1], 0.0)                       # relu(fc2)
    q = jnp.dot(h.astype(compute_dtype), w_ref[2],
                preferred_element_type=jnp.float32)
    out_ref[...] = (q + b_ref[2]).astype(out_ref.dtype)      # fc3 (no act)


def init_qnetwork_params(key, state_size, action_size, hidden_size=64):
    """nn.Linear-style init: U(-1/sqrt(fan_in), +1/sqrt(fan_in)).
    Weights stored [in, out] (transposed vs torch) so the kernel does x @ W."""
    def linear_init(k, fan_in, fan_out):
        kw, kb = jax.random.split(k)
        bound = 1.0 / jnp.sqrt(float(fan_in))
        w = jax.random.uniform(kw, (fan_in, fan_out), jnp.float32,
                               minval=-bound, maxval=bound)
        b = jax.random.uniform(kb, (fan_out,), jnp.float32,
                               minval=-bound, maxval=bound)
        return w, b

    k1, k2, k3 = jax.random.split(key, 3)
    w1, b1 = linear_init(k1, state_size, hidden_size)
    w2, b2 = linear_init(k2, hidden_size, hidden_size)
    w3, b3 = linear_init(k3, hidden_size, action_size)
    return {"w1": w1, "b1": b1, "w2": w2, "b2": b2, "w3": w3, "b3": b3}


def pack_qnetwork_params(params, lane=LANE, weight_dtype=jnp.bfloat16):
    """Zero-pad each layer to [lane, lane] / [1, lane] and stack into two
    contiguous buffers (one weight DMA + one bias DMA per call). Weights are
    stored bf16 (halves the dominant DMA); biases stay f32 for the VPU add."""
    w1, w2, w3 = params["w1"], params["w2"], params["w3"]
    b1, b2, b3 = params["b1"], params["b2"], params["b3"]
    S, H = w1.shape
    A = w3.shape[1]
    assert max(S, H, A) <= lane, "lane-padding plan assumes feature dims <= 128"

    W = jnp.zeros((3, lane, lane), weight_dtype)
    W = W.at[0, :S, :H].set(w1.astype(weight_dtype))
    W = W.at[1, :H, :H].set(w2.astype(weight_dtype))
    W = W.at[2, :H, :A].set(w3.astype(weight_dtype))

    Bp = jnp.zeros((3, 1, lane), jnp.float32)
    Bp = Bp.at[0, 0, :H].set(b1)
    Bp = Bp.at[1, 0, :H].set(b2)
    Bp = Bp.at[2, 0, :A].set(b3)
    return W, Bp


def _round_up(x, m):
    return ((x + m - 1) // m) * m


def _pick_batch_tile(batch, max_tile=MAX_BATCH_TILE):
    """Tiny batches: one exact-size block (no padded-row DMA, legal because a
    block dim equal to the full array dim needs no 8/128 alignment).
    Large batches: 256-multiple tiles, capped, with >=2 tiles so v7x's two
    TensorCores both get work via the 'parallel' grid axis."""
    if batch <= 256:
        return batch
    return min(max_tile, _round_up(pl.cdiv(batch, 2), 256))


@functools.partial(jax.jit, static_argnames=("action_size",))
def qnetwork_forward(state, w_packed, b_packed, *, action_size):
    """state: [B, state_size] f32. Returns [B, action_size] f32 Q-values."""
    B, S = state.shape
    lane = w_packed.shape[-1]
    batch_tile = _pick_batch_tile(B)
    n_tiles = pl.cdiv(B, batch_tile)

    kernel = functools.partial(qnetwork_kernel, state_size=S,
                               compute_dtype=w_packed.dtype)

    out = pl.pallas_call(
        kernel,
        out_shape=jax.ShapeDtypeStruct((B, lane), jnp.float32),
        grid_spec=pltpu.PrefetchScalarGridSpec(
            num_scalar_prefetch=0,
            grid=(n_tiles,),
            in_specs=[
                # State kept at its natural [B, S] shape: no lane/batch
                # zero-padding traffic; ragged last block handled by Pallas.
                pl.BlockSpec((batch_tile, S), lambda i: (i, 0)),
                # Constant-index weights/biases: single-buffered.
                pl.BlockSpec((3, lane, lane), lambda i: (0, 0, 0),
                             pipeline_mode=pl.Buffered(1)),
                pl.BlockSpec((3, 1, lane), lambda i: (0, 0, 0),
                             pipeline_mode=pl.Buffered(1)),
            ],
            out_specs=pl.BlockSpec((batch_tile, lane), lambda i: (i, 0)),
        ),
        compiler_params=pltpu.CompilerParams(
            dimension_semantics=("parallel",)),
    )(state, w_packed, b_packed)

    return out[:, :action_size]


def qnetwork_ref(state, params, compute_dtype=jnp.bfloat16):
    """Pure-JAX reference mirroring the kernel numerics (bf16 dot inputs,
    f32 accumulation / bias / relu)."""
    c = lambda a: a.astype(compute_dtype)

    def dense(x, w, b):
        return jnp.dot(c(x), c(w), preferred_element_type=jnp.float32) + b

    h = jnp.maximum(dense(state, params["w1"], params["b1"]), 0.0)
    h = jnp.maximum(dense(h, params["w2"], params["b2"]), 0.0)
    return dense(h, params["w3"], params["b3"])


if __name__ == "__main__":
    # CartPole: state_size=4, action_size=2, hidden_size=64.
    state_size, action_size, hidden_size = 4, 2, 64

    key = jax.random.PRNGKey(0)
    k_params, k_state = jax.random.split(key)
    params = init_qnetwork_params(k_params, state_size, action_size,
                                  hidden_size)
    w_packed, b_packed = pack_qnetwork_params(params)

    # batch=2: tiny act-path block; batch=64: single mid-size block;
    # batch=300: 2-tile parallel grid with a ragged last block.
    for batch in (2, 64, 300):
        state = jax.random.normal(jax.random.fold_in(k_state, batch),
                                  (batch, state_size), jnp.float32)
        q = qnetwork_forward(state, w_packed, b_packed,
                             action_size=action_size)
        q = jax.block_until_ready(q)

        q_ref = qnetwork_ref(state, params)
        assert q.shape == (batch, action_size)
        err = float(jnp.max(jnp.abs(q - q_ref)))
        assert jnp.allclose(q, q_ref, atol=2e-2, rtol=2e-2), (
            f"Pallas kernel mismatch at batch={batch}: max abs err {err:.3e}")

    print("KERNEL_OK")
</pallas_src>

<mosaic_0001>
module attributes {stable_mosaic.version = 11 : i64} {
  func.func @qnetwork_kernel(%arg0: i32, %arg1: memref<2x4xf32, #tpu.memory_space<vmem>>, %arg2: memref<3x128x128xbf16, #tpu.memory_space<vmem>>, %arg3: memref<3x1x128xf32, #tpu.memory_space<vmem>>, %arg4: memref<2x128xf32, #tpu.memory_space<vmem>>) attributes {dimension_semantics = [#tpu.dimension_semantics<parallel>], iteration_bounds = array<i64: 1>, scalar_prefetch = 0 : i64, scratch_operands = 0 : i64, tpu.core_type = #tpu.core_type<tc>, window_params = [{transform_indices = @transform_0, window_bounds = array<i64: 2, 4>}, {pipeline_mode = #tpu.pipeline_mode<synchronous>, transform_indices = @transform_1, window_bounds = array<i64: 3, 128, 128>}, {pipeline_mode = #tpu.pipeline_mode<synchronous>, transform_indices = @transform_2, window_bounds = array<i64: 3, 1, 128>}, {transform_indices = @transform_3, window_bounds = array<i64: 2, 128>}]} {
    %c0 = arith.constant 0 : index
    %c0_0 = arith.constant 0 : index
    %0 = vector.load %arg1[%c0, %c0_0] : memref<2x4xf32, #tpu.memory_space<vmem>>, vector<2x4xf32>
    %1 = arith.truncf %0 : vector<2x4xf32> to vector<2x4xbf16>
    %c0_1 = arith.constant 0 : index
    %c0_2 = arith.constant 0 : index
    %c0_3 = arith.constant 0 : index
    %2 = vector.load %arg2[%c0_1, %c0_2, %c0_3] : memref<3x128x128xbf16, #tpu.memory_space<vmem>>, vector<1x4x128xbf16>
    %3 = vector.shape_cast %2 : vector<1x4x128xbf16> to vector<4x128xbf16>
    %cst = arith.constant dense<0.000000e+00> : vector<2x128xf32>
    %4 = tpu.matmul %1, %3, %cst {dimension_numbers = #tpu.dot_dimension_numbers<[1], [0], [0], [1], [0, 0, 1, 1], [], []>} : vector<2x4xbf16>, vector<4x128xbf16>, vector<2x128xf32> -> vector<2x128xf32>
    %c0_4 = arith.constant 0 : index
    %c0_5 = arith.constant 0 : index
    %c0_6 = arith.constant 0 : index
    %5 = vector.load %arg3[%c0_4, %c0_5, %c0_6] : memref<3x1x128xf32, #tpu.memory_space<vmem>>, vector<1x1x128xf32>
    %6 = vector.shape_cast %5 : vector<1x1x128xf32> to vector<1x128xf32>
    %7 = vector.broadcast %6 : vector<1x128xf32> to vector<2x128xf32>
    %8 = arith.addf %4, %7 : vector<2x128xf32>
    %cst_7 = arith.constant 0.000000e+00 : f32
    %9 = vector.broadcast %cst_7 : f32 to vector<2x128xf32>
    %10 = arith.maximumf %8, %9 : vector<2x128xf32>
    %11 = arith.truncf %10 : vector<2x128xf32> to vector<2x128xbf16>
    %c1 = arith.constant 1 : index
    %c0_8 = arith.constant 0 : index
    %c0_9 = arith.constant 0 : index
    %12 = vector.load %arg2[%c1, %c0_8, %c0_9] : memref<3x128x128xbf16, #tpu.memory_space<vmem>>, vector<1x128x128xbf16>
    %13 = vector.shape_cast %12 : vector<1x128x128xbf16> to vector<128x128xbf16>
    %cst_10 = arith.constant dense<0.000000e+00> : vector<2x128xf32>
    %14 = tpu.matmul %11, %13, %cst_10 {dimension_numbers = #tpu.dot_dimension_numbers<[1], [0], [0], [1], [0, 0, 1, 1], [], []>} : vector<2x128xbf16>, vector<128x128xbf16>, vector<2x128xf32> -> vector<2x128xf32>
    %c1_11 = arith.constant 1 : index
    %c0_12 = arith.constant 0 : index
    %c0_13 = arith.constant 0 : index
    %15 = vector.load %arg3[%c1_11, %c0_12, %c0_13] : memref<3x1x128xf32, #tpu.memory_space<vmem>>, vector<1x1x128xf32>
    %16 = vector.shape_cast %15 : vector<1x1x128xf32> to vector<1x128xf32>
    %17 = vector.broadcast %16 : vector<1x128xf32> to vector<2x128xf32>
    %18 = arith.addf %14, %17 : vector<2x128xf32>
    %cst_14 = arith.constant 0.000000e+00 : f32
    %19 = vector.broadcast %cst_14 : f32 to vector<2x128xf32>
    %20 = arith.maximumf %18, %19 : vector<2x128xf32>
    %21 = arith.truncf %20 : vector<2x128xf32> to vector<2x128xbf16>
    %c2 = arith.constant 2 : index
    %c0_15 = arith.constant 0 : index
    %c0_16 = arith.constant 0 : index
    %22 = vector.load %arg2[%c2, %c0_15, %c0_16] : memref<3x128x128xbf16, #tpu.memory_space<vmem>>, vector<1x128x128xbf16>
    %23 = vector.shape_cast %22 : vector<1x128x128xbf16> to vector<128x128xbf16>
    %cst_17 = arith.constant dense<0.000000e+00> : vector<2x128xf32>
    %24 = tpu.matmul %21, %23, %cst_17 {dimension_numbers = #tpu.dot_dimension_numbers<[1], [0], [0], [1], [0, 0, 1, 1], [], []>} : vector<2x128xbf16>, vector<128x128xbf16>, vector<2x128xf32> -> vector<2x128xf32>
    %c2_18 = arith.constant 2 : index
    %c0_19 = arith.constant 0 : index
    %c0_20 = arith.constant 0 : index
    %25 = vector.load %arg3[%c2_18, %c0_19, %c0_20] : memref<3x1x128xf32, #tpu.memory_space<vmem>>, vector<1x1x128xf32>
    %26 = vector.shape_cast %25 : vector<1x1x128xf32> to vector<1x128xf32>
    %27 = vector.broadcast %26 : vector<1x128xf32> to vector<2x128xf32>
    %28 = arith.addf %24, %27 : vector<2x128xf32>
    %c0_21 = arith.constant 0 : index
    %c0_22 = arith.constant 0 : index
    %29 = vector.load %arg4[%c0_21, %c0_22] : memref<2x128xf32, #tpu.memory_space<vmem>>, vector<2x128xf32>
    tpu.vector_store %arg4[%c0_21, %c0_22], %28 {strides = array<i32>} : memref<2x128xf32, #tpu.memory_space<vmem>>, vector<2x128xf32>,
    return
  }
  func.func @transform_0(%arg0: i32) -> (i32, i32) {
    %c0_i32 = arith.constant 0 : i32
    %c0_i32_0 = arith.constant 0 : i32
    return %arg0, %c0_i32 : i32, i32
  }
  func.func @transform_1(%arg0: i32) -> (i32, i32, i32) {
    %c0_i32 = arith.constant 0 : i32
    %c0_i32_0 = arith.constant 0 : i32
    %c0_i32_1 = arith.constant 0 : i32
    %c0_i32_2 = arith.constant 0 : i32
    return %c0_i32, %c0_i32_0, %c0_i32_1 : i32, i32, i32
  }
  func.func @transform_2(%arg0: i32) -> (i32, i32, i32) {
    %c0_i32 = arith.constant 0 : i32
    %c0_i32_0 = arith.constant 0 : i32
    %c0_i32_1 = arith.constant 0 : i32
    %c0_i32_2 = arith.constant 0 : i32
    return %c0_i32, %c0_i32_0, %c0_i32_1 : i32, i32, i32
  }
  func.func @transform_3(%arg0: i32) -> (i32, i32) {
    %c0_i32 = arith.constant 0 : i32
    %c0_i32_0 = arith.constant 0 : i32
    return %arg0, %c0_i32 : i32, i32
  }
}

</mosaic_0001>

<bundles_post_ra>
// kernel: qnetwork_forward.1
= control target key start
LH: loop header
LB: loop body
LE: loop exit
PB: predicated region body
PF: predicated region fallthrough
CT: control target
= control target key end

     0   :  { %8 = vsyncpa [#allocation3], 0  ;;  %s632_s0 = inlined_call_operand.hbm [shape: f32[2,4], index: 0, kind: input, shape index: {}]   ;;  %s633_s1 = inlined_call_operand.hbm [shape: bf16[3,128,128], index: 1, kind: input, shape index: {}]   ;;  %s634_s2 = inlined_call_operand.vmem [shape: f32[3,1,128], index: 2, kind: input, shape index: {}]   ;;  %s635_s3 = inlined_call_operand.hbm [shape: f32[2,128], index: 3, kind: output, shape index: {}]  }
   0x1   :  { %9 = vsyncpa [#allocation6], 0 }
   0x2   :  { %10 = vsyncpa [#allocation4], 0  ;;  %s530_s12 = smov [#allocation2]   ;;  %s531_s14 = smov [#allocation5]  }
   0x3   :  { %s17_s13 = sshll.u32 %s530_s12, 4  ;;  %s26_s15 = sshll.u32 %s531_s14, 4  ;;  %s18_s13 = int_to_ptr.vmem [resolvable:$true] %s17_s13  ;;  %s557_s15 = int_to_ptr.vmem [resolvable:$true] %s26_s15 }
   0x4   :  { %s458_s18 = scalar_lea.hbm %s632_s0, 32 }
   0x5   :  { %p459_p0 = scmp.ne.s32.totalorder %s632_s0, %s458_s18  ;;  %p462_p1 = scmp.lt.u32.totalorder %s458_s18, %s632_s0 }
   0x7   :  { %p464_p2 = pnand %p462_p1, %p459_p0 }
   0x9   :  { %467 = shalt.err (!%p464_p2)
}
   0xa   :  { %s468_s23 = scalar_lea.vmem %s18_s13, 32  ;;  %p473_p4 = scmp.lt.s32.totalorder %s18_s13, %s18_s13 }
   0xb   :  { %p469_p3 = scmp.ne.s32.totalorder %s18_s13, %s468_s23  ;;  %p474_p5 = scmp.lt.s32.totalorder %s468_s23, %s468_s23 }
   0xd   :  { %p475_p6 = por %p474_p5, %p473_p4 }
   0xf   :  { %p476_p7 = pnand %p475_p6, %p469_p3 }
  0x11   :  { %479 = shalt.err (!%p476_p7)
}
  0x12   :  { %20 = dma.hbm_to_vmem [thread:$0]  %s632_s0, 32, %s18_s13, [#allocation3]  }
  0x13   :  { %s480_s28 = scalar_lea.hbm %s633_s1, 3072 }
  0x14   :  { %p481_p8 = scmp.ne.s32.totalorder %s633_s1, %s480_s28  ;;  %p484_p9 = scmp.lt.u32.totalorder %s480_s28, %s633_s1 }
  0x16   :  { %p486_p10 = pnand %p484_p9, %p481_p8 }
  0x18   :  { %489 = shalt.err (!%p486_p10)
}
  0x19   :  { %s490_s6 = scalar_lea.vmem %s557_s15, 3072  ;;  %p495_p12 = scmp.lt.s32.totalorder %s557_s15, %s557_s15 }
  0x1a   :  { %p491_p11 = scmp.ne.s32.totalorder %s557_s15, %s490_s6  ;;  %p496_p13 = scmp.lt.s32.totalorder %s490_s6, %s490_s6 }
  0x1c   :  { %p497_p0 = por %p496_p13, %p495_p12 }
  0x1e   :  { %p498_p1 = pnand %p497_p0, %p491_p11 }
  0x20   :  { %501 = shalt.err (!%p498_p1)
}
  0x21   :  { %s532_s0 = smov 64   ;;  %s533_s7 = smov 4  }
  0x22   :  { %32 = dma.hbm_to_vmem [thread:$0]  %s633_s1, 3072, %s557_s15, [#allocation6], %s532_s0, %s532_s0, %s533_s7  }
  0x23   :  { %524 = dma.done.wait [#allocation3], 32  }
  0x24   :  { %525 = vsyncadd [#allocation3], 4294967264 }
  0x25   :  { %526 = dma.done.wait [#allocation6], 3072  }
  0x26   :  { %527 = vsyncadd [#allocation6], 4294964224  ;;  %v534_v0 = vmov 0.0   ;;  %vm535_vm0 = vmmov 0   ;;  %vm56_vm1 = vcmask 1041408   ;;  %v442_v5 = vld [vmem:[#allocation5 + $0x40] sm:$0xff]  }
  0x27   :  { %389 = vmatprep.subr.bf16.mxu0 %v534_v0  ;;  %391 = vmatprep.mubr.msk.bf16.mxu0 %vm535_vm0, %v534_v0  ;;  %v44_v1 = vld [vmem:[#allocation5] sm:$0x3]  ;;  %v42_v2 = vld [vmem:[#allocation2] sm:$0x3]  ;;  %vm52_vm2 = vcmask 31744   ;;  %v443_v6 = vld [vmem:[#allocation5 + $0x48] sm:$0xff]  }
  0x28   :  { %395 = vmatprep.subr.bf16.mxu1 %v534_v0  ;;  %411 = vmatprep.mubr.msk.bf16.mxu1 %vm535_vm0, %v534_v0  ;;  %v58_v3 = vsel %vm56_vm1, %v44_v1, 0  ;;  %v43_v4 = vpack.c.bf16 %v42_v2, %v42_v2  ;;  %v444_v7 = vld [vmem:[#allocation5 + $0x50] sm:$0xff]   ;;  %v445_v8 = vld [vmem:[#allocation5 + $0x58] sm:$0xff]   ;;  %v446_v9 = vld [vmem:[#allocation5 + $0x60] sm:$0xff]   ;;  %s536_s15 = smov [#allocation7]  }
  0x29   :  { %390 = vmatpush3.bf16.msra.mxu0 %v58_v3  ;;  %396 = vmatpush3.bf16.msra.mxu1 %v442_v5  ;;  %v447_v10 = vld [vmem:[#allocation5 + $0x68] sm:$0xff]   ;;  %v448_v11 = vld [vmem:[#allocation5 + $0x70] sm:$0xff]   ;;  %v449_v12 = vld [vmem:[#allocation5 + $0x78] sm:$0xff]   ;;  %s337_s16 = sshll.u32 %s536_s15, 4  ;;  %s338_s16 = int_to_ptr.vmem [resolvable:$true] %s337_s16 }
  0x2a   :  { %415 = vmatprep.subr.bf16.mxu0 %v534_v0  ;;  %397 = vmatprep.subr.bf16.mxu1 %v534_v0  ;;  %v450_v13 = vld [vmem:[#allocation5 + $0x80] sm:$0xff]   ;;  %v451_v14 = vld [vmem:[#allocation5 + $0x88] sm:$0xff]   ;;  %v452_v15 = vld [vmem:[#allocation5 + $0x90] sm:$0xff]   ;;  %s502_s17 = scalar_lea.vmem %s338_s16, 32  ;;  %p507_p3 = scmp.lt.s32.totalorder %s338_s16, %s338_s16 }
  0x2b   :  { %v453_v16 = vld [vmem:[#allocation5 + $0x98] sm:$0xff]   ;;  %v454_v17 = vld [vmem:[#allocation5 + $0xa0] sm:$0xff]   ;;  %v455_v18 = vld [vmem:[#allocation5 + $0xa8] sm:$0xff]   ;;  %p503_p2 = scmp.ne.s32.totalorder %s338_s16, %s502_s17  ;;  %p508_p4 = scmp.lt.s32.totalorder %s502_s17, %s502_s17 }
  0x2c   :  { %392 = vmatmul.mubr.msk.bf16.vlgmr.msra.gmra.mrb[0].mxu0 %vm52_vm2, %v43_v4  ;;  %v347_v19 = vld [vmem:[%s634_s2] ss:$0 sm:$0xff]  ;;  %v457_v28 = vld [vmem:[#allocation5 + $0xb8] sm:$0xff]   ;;  %v350_v29 = vld [vmem:[%s634_s2 + $0x1] ss:$0 sm:$0xff] }
  0x2d   :  { %431 = vmatprep.mubr.msk.bf16.mxu0 %vm535_vm0, %v534_v0  ;;  %398 = vmatpush3.bf16.msra.mxu1 %v443_v6  ;;  %v456_v27 = vld [vmem:[#allocation5 + $0xb0] sm:$0xff]   ;;  %v360_v37 = vld [vmem:[%s634_s2 + $0x2] ss:$0 sm:$0xff]  ;;  %p509_p5 = por %p508_p4, %p507_p3 }
  0x2e   :  { %399 = vmatprep.subr.bf16.mxu1 %v534_v0  ;;  %416 = vmatpush3.bf16.msra.mxu0 %v450_v13 }
  0x2f   :  { %417 = vmatprep.subr.bf16.mxu0 %v534_v0  ;;  %p510_p6 = pnand %p509_p5, %p503_p2 }
  0x31   :  { %400 = vmatpush3.bf16.msra.mxu1 %v444_v7 }
  0x32   :  { %401 = vmatprep.subr.bf16.mxu1 %v534_v0  ;;  %418 = vmatpush3.bf16.msra.mxu0 %v451_v14 }
  0x33   :  { %419 = vmatprep.subr.bf16.mxu0 %v534_v0 }
  0x35   :  { %402 = vmatpush3.bf16.msra.mxu1 %v445_v8 }
  0x36   :  { %403 = vmatprep.subr.bf16.mxu1 %v534_v0  ;;  %420 = vmatpush3.bf16.msra.mxu0 %v452_v15 }
  0x37   :  { %421 = vmatprep.subr.bf16.mxu0 %v534_v0 }
  0x39   :  { %404 = vmatpush3.bf16.msra.mxu1 %v446_v9 }
  0x3a   :  { %405 = vmatprep.subr.bf16.mxu1 %v534_v0  ;;  %422 = vmatpush3.bf16.msra.mxu0 %v453_v16 }
  0x3b   :  { %423 = vmatprep.subr.bf16.mxu0 %v534_v0 }
  0x3d   :  { %406 = vmatpush3.bf16.msra.mxu1 %v447_v10 }
  0x3e   :  { %407 = vmatprep.subr.bf16.mxu1 %v534_v0  ;;  %424 = vmatpush3.bf16.msra.mxu0 %v454_v17 }
  0x3f   :  { %425 = vmatprep.subr.bf16.mxu0 %v534_v0 }
  0x41   :  { %408 = vmatpush3.bf16.msra.mxu1 %v448_v11 }
  0x42   :  { %409 = vmatprep.subr.bf16.mxu1 %v534_v0  ;;  %426 = vmatpush3.bf16.msra.mxu0 %v455_v18 }
  0x43   :  { %427 = vmatprep.subr.bf16.mxu0 %v534_v0 }
  0x45   :  { %410 = vmatpush3.bf16.msra.mxu1 %v449_v12 }
  0x46   :  { %428 = vmatpush3.bf16.msra.mxu0 %v456_v27 }
  0x47   :  { %429 = vmatprep.subr.bf16.mxu0 %v534_v0 }
  0x4a   :  { %430 = vmatpush3.bf16.msra.mxu0 %v457_v28 }
  0xff   :  { %v94_v20 = vpop.f32.mrb[0].mxu0 }
 0x100   :  { %v95_v21 = vadd.f32 %v347_v19, %v94_v20  ;;  %v393_v22 = vpop.f32.mrb[1].mxu0 }
 0x101   :  { %v97_v23 = vpop.f32.mrb[2].mxu0 }
 0x102   :  { %v100_v24 = vmax.f32 %v95_v21, 0.0  ;;  %v394_v25 = vpop.f32.mrb[3].mxu0 }
 0x104   :  { %v101_v26 = vpack.c.bf16 %v100_v24, %v100_v24 }
 0x106   :  { %412 = vmatmul.mubr.bf16.vlgmr.msra.gmra.mrb[0].mxu1 %v101_v26 }
 0x1d9   :  { %v209_v30 = vpop.f32.mrb[0].mxu1 }
 0x1da   :  { %v210_v31 = vadd.f32 %v350_v29, %v209_v30  ;;  %v413_v32 = vpop.f32.mrb[1].mxu1 }
 0x1db   :  { %v212_v33 = vpop.f32.mrb[2].mxu1 }
 0x1dc   :  { %v215_v34 = vmax.f32 %v210_v31, 0.0  ;;  %v414_v35 = vpop.f32.mrb[3].mxu1 }
 0x1de   :  { %v216_v36 = vpack.c.bf16 %v215_v34, %v215_v34 }
 0x1e0   :  { %432 = vmatmul.mubr.bf16.vlgmr.msra.gmra.mrb[4].mxu0 %v216_v36 }
 0x2b3   :  { %v324_v38 = vpop.f32.mrb[4].mxu0 }
 0x2b4   :  { %v325_v39 = vadd.f32 %v360_v37, %v324_v38  ;;  %v433_v40 = vpop.f32.mrb[5].mxu0 }
 0x2b5   :  { %v327_v41 = vpop.f32.mrb[6].mxu0 }
 0x2b6   :  { %330 = vst [vmem:[#allocation7] sm:$0x3] %v325_v39  ;;  %v434_v42 = vpop.f32.mrb[7].mxu0 }
 0x2b7   :  { %513 = shalt.err (!%p510_p6)
}
 0x2b8   :  { %s514_s2 = scalar_lea.hbm %s635_s3, 32 }
 0x2b9   :  { %p515_p7 = scmp.ne.s32.totalorder %s635_s3, %s514_s2  ;;  %p518_p8 = scmp.lt.u32.totalorder %s514_s2, %s635_s3 }
 0x2bb   :  { %p520_p9 = pnand %p518_p8, %p515_p7 }
 0x2bd   :  { %523 = shalt.err (!%p520_p9)
}
 0x2be   :  { %340 = dma.vmem_to_hbm [thread:$0]  %s338_s16, 32, %s635_s3, [#allocation4]  }
 0x2bf   :  { %528 = dma.done.wait [#allocation4], 32  }
 0x2c0   :  { %529 = vsyncadd [#allocation4], 4294967264 }
 0x2c1   :  { %344 = vsyncpa [#allocation3], 1 }
 0x2c2   :  { %345 = vsyncpa [#allocation6], 1 }
 0x2c3   :  { %346 = vsyncpa [#allocation4], 1 }

</bundles_post_ra>
